<compile_context>
chip_gen: v7x
topology: tpu7x:2x2x1
jax: 0.10.0
libtpu: 0.0.40
codegen_flags: <defaults>
</compile_context>

<pallas_src>
import jax
import jax.numpy as jnp
from jax import lax
from jax.experimental import pallas as pl
from jax.experimental.pallas import tpu as pltpu

_EPS = 1e-5


# ----------------------------------------------------------------------------
# Hardware-aware budgets
# ----------------------------------------------------------------------------
def _vmem_capacity_bytes():
    try:
        info = pltpu.get_tpu_info()
        for name in ("vmem_capacity_bytes", "vmem_size_bytes", "vmem_bytes"):
            v = getattr(info, name, None)
            if v:
                return int(v)
    except Exception:
        pass
    # Conservative fallback: safe on v5e/v6e (128 MiB physical) and v7x (64 MiB).
    return 64 * 1024 * 1024


def _budgets():
    cap = _vmem_capacity_bytes()
    vmem_limit = min(64 * 1024 * 1024, int(cap * 0.65))
    tile_target = min(8 * 1024 * 1024, vmem_limit // 6)
    return vmem_limit, tile_target


# ----------------------------------------------------------------------------
# Tiling
# ----------------------------------------------------------------------------
def _choose_tiles(n, c, hw, itemsize, target):
    """Pick (tile_n, tile_c, tile_hw) with legal (8,128)-compatible blocks."""
    # HW (lane) tile: largest multiple of 128 dividing hw within a cap, or the
    # full extent when hw is not 128-aligned (full extent is always legal).
    if hw % 128 == 0:
        hw_cap = max(128, (target // (itemsize * max(1, min(c, 8)))) // 128 * 128)
        tile_hw, t = 128, 128
        while t <= min(hw, hw_cap):
            if hw % t == 0:
                tile_hw = t
            t += 128
    else:
        tile_hw = hw

    # C (sublane) tile: bound tile_c * tile_hw; tile_c must be a multiple of 8
    # (or the full extent) for a legal block.
    tile_c = c
    if c * tile_hw * itemsize > target and c % 8 == 0:
        tile_c = 8
        d = c
        while d >= 8:
            if c % d == 0 and d * tile_hw * itemsize <= target:
                tile_c = d
                break
            d -= 8
    # TODO(synk): if hw % 128 != 0 AND c is not a multiple of 8 AND c*hw is
    # huge, the block cannot be bounded without padding HW; not handled.

    # N tile: small cap; in-kernel slab loop keeps f32 temporaries bounded.
    cap_n = max(1, target // max(1, tile_c * tile_hw * itemsize))
    cap_n = min(cap_n, 8, n)
    tile_n = 1
    for d in range(cap_n, 0, -1):
        if n % d == 0:
            tile_n = d
            break
    return tile_n, tile_c, tile_hw


# ----------------------------------------------------------------------------
# Kernels
# ----------------------------------------------------------------------------
def _make_stats_kernel(tile_n):
    """Per-(N-tile, C-tile) partial sum / sum-of-squares, accumulated over HW."""

    def kernel(x_ref, psum_ref, psq_ref):
        @pl.when(pl.program_id(2) == 0)
        def _():
            psum_ref[...] = jnp.zeros_like(psum_ref)
            psq_ref[...] = jnp.zeros_like(psq_ref)

        def slab(s, carry):
            xs = x_ref[s].astype(jnp.float32)                      # (tile_c, tile_hw)
            psum_ref[0] += jnp.sum(xs, axis=1, keepdims=True)      # (tile_c, 1)
            psq_ref[0] += jnp.sum(xs * xs, axis=1, keepdims=True)  # (tile_c, 1)
            return carry

        lax.fori_loop(0, tile_n, slab, 0, unroll=True)

    return kernel


def _make_norm_kernel(tile_n):
    """Pure per-element FMA: y = x * scale[c] + shift[c], slab-wise over N."""

    def kernel(x_ref, scale_ref, shift_ref, o_ref):
        scale = scale_ref[...]            # (tile_c, 1)
        shift = shift_ref[...]            # (tile_c, 1)

        def slab(s, carry):
            xs = x_ref[s].astype(jnp.float32)                      # (tile_c, tile_hw)
            o_ref[s] = (xs * scale + shift).astype(o_ref.dtype)
            return carry

        lax.fori_loop(0, tile_n, slab, 0, unroll=True)

    return kernel


def _make_resident_kernel(count, eps):
    """Single-pass path: x resident in VMEM, two-pass stats + normalize."""
    inv_count = 1.0 / float(count)

    def kernel(x_ref, gamma_ref, beta_ref, o_ref):
        x = x_ref[...].astype(jnp.float32)                         # (n, c, hw)
        s = jnp.sum(jnp.sum(x, axis=2, keepdims=True), axis=0, keepdims=True)
        mean = s * inv_count                                       # (1, c, 1)
        d = x - mean
        v = jnp.sum(jnp.sum(d * d, axis=2, keepdims=True), axis=0, keepdims=True)
        inv_std = lax.rsqrt(v * inv_count + eps)                   # (1, c, 1)
        scale = gamma_ref[...][None, :, :] * inv_std               # (1, c, 1)
        beta = beta_ref[...][None, :, :]
        o_ref[...] = (d * scale + beta).astype(o_ref.dtype)

    return kernel


# ----------------------------------------------------------------------------
# Wrapper (floating_point forward of CustomBatchNorm)
# ----------------------------------------------------------------------------
def custom_batchnorm(x_nchw, gamma, beta, eps=_EPS, *, force_tiled=False,
                     tile_bytes_target=None):
    n, c, h, w = x_nchw.shape
    hw = h * w
    x3 = x_nchw.reshape(n, c, hw)                    # free reshape, no transpose
    gamma2 = gamma.reshape(c, 1).astype(jnp.float32)
    beta2 = beta.reshape(c, 1).astype(jnp.float32)
    count = n * hw

    vmem_limit, auto_target = _budgets()
    target = int(tile_bytes_target) if tile_bytes_target else auto_target
    f32_bytes = n * c * hw * 4

    # ---- Single-pass resident path (read x once, write y once) -------------
    if not force_tiled and 6 * f32_bytes <= vmem_limit:
        y3 = pl.pallas_call(
            _make_resident_kernel(count, eps),
            out_shape=jax.ShapeDtypeStruct((n, c, hw), x3.dtype),
            grid=(1,),
            in_specs=[pl.BlockSpec((n, c, hw), lambda i: (0, 0, 0)),
                      pl.BlockSpec((c, 1), lambda i: (0, 0)),
                      pl.BlockSpec((c, 1), lambda i: (0, 0))],
            out_specs=pl.BlockSpec((n, c, hw), lambda i: (0, 0, 0)),
            compiler_params=pltpu.CompilerParams(
                dimension_semantics=("arbitrary",),
                vmem_limit_bytes=vmem_limit),
        )(x3, gamma2, beta2)
        return y3.reshape(n, c, h, w)

    # ---- Two-sweep tiled path ----------------------------------------------
    itemsize = jnp.dtype(x3.dtype).itemsize
    tile_n, tile_c, tile_hw = _choose_tiles(n, c, hw, itemsize, target)
    grid = (n // tile_n, c // tile_c, hw // tile_hw)

    x_spec = pl.BlockSpec((tile_n, tile_c, tile_hw),
                          lambda ni, ci, hi: (ni, ci, hi))
    part_spec = pl.BlockSpec((1, tile_c, 1), lambda ni, ci, hi: (ni, ci, 0))

    # Sweep 1: per-(N-tile) partial per-channel sums (megacore-shardable).
    psum, psq = pl.pallas_call(
        _make_stats_kernel(tile_n),
        out_shape=(jax.ShapeDtypeStruct((grid[0], c, 1), jnp.float32),
                   jax.ShapeDtypeStruct((grid[0], c, 1), jnp.float32)),
        grid_spec=pltpu.PrefetchScalarGridSpec(
            num_scalar_prefetch=0,
            grid=grid,
            in_specs=[x_spec],
            out_specs=[part_spec, part_spec],
        ),
        compiler_params=pltpu.CompilerParams(
            dimension_semantics=("parallel", "parallel", "arbitrary"),
            vmem_limit_bytes=vmem_limit),
    )(x3)

    # Tiny finalize in plain JAX: fold gamma/beta into per-channel scale/shift.
    s = jnp.sum(psum, axis=0)                         # (c, 1)
    sq = jnp.sum(psq, axis=0)                         # (c, 1)
    mean = s / count
    var = sq / count - mean * mean                    # biased variance (training BN)
    inv_std = lax.rsqrt(var + eps)
    scale = gamma2 * inv_std
    shift = beta2 - mean * scale

    # Sweep 2: normalize (fully parallel grid, lane-dense FMA).
    vec_spec = pl.BlockSpec((tile_c, 1), lambda ni, ci, hi: (ci, 0))
    y3 = pl.pallas_call(
        _make_norm_kernel(tile_n),
        out_shape=jax.ShapeDtypeStruct((n, c, hw), x3.dtype),
        grid_spec=pltpu.PrefetchScalarGridSpec(
            num_scalar_prefetch=0,
            grid=grid,
            in_specs=[x_spec, vec_spec, vec_spec],
            out_specs=x_spec,
        ),
        compiler_params=pltpu.CompilerParams(
            dimension_semantics=("parallel", "parallel", "parallel"),
            vmem_limit_bytes=vmem_limit),
    )(x3, scale, shift)

    return y3.reshape(n, c, h, w)


if __name__ == "__main__":
    key = jax.random.PRNGKey(0)

    def reference(x, gamma, beta, eps=_EPS):
        mean = jnp.mean(x, axis=(0, 2, 3), keepdims=True)
        var = jnp.mean((x - mean) ** 2, axis=(0, 2, 3), keepdims=True)
        g = gamma.reshape(1, -1, 1, 1)
        b = beta.reshape(1, -1, 1, 1)
        return (x - mean) * lax.rsqrt(var + eps) * g + b

    def check(x, gamma, beta, **kw):
        out = jax.block_until_ready(custom_batchnorm(x, gamma, beta, **kw))
        ref = reference(x, gamma, beta)
        assert out.shape == x.shape
        err = float(jnp.max(jnp.abs(out - ref)))
        assert err < 2e-4, err

    # Case 1: module-consistent small shape -> VMEM-resident single-pass path.
    N, C, H, W = 2, 4, 16, 16
    x = jax.random.normal(key, (N, C, H, W), dtype=jnp.float32)
    gamma = jnp.ones((C,), jnp.float32)   # PyTorch BatchNorm2d affine defaults
    beta = jnp.zeros((C,), jnp.float32)
    check(x, gamma, beta)

    # Case 2: same shape forced through the two-sweep tiled path.
    check(x, gamma, beta, force_tiled=True)

    # Case 3: tiled path with a multi-step grid (N-, C- and HW-tiling active).
    k1, k2 = jax.random.split(key)
    x3 = jax.random.normal(k1, (4, 16, 16, 24), dtype=jnp.float32)
    check(x3, jnp.ones((16,), jnp.float32), jnp.zeros((16,), jnp.float32),
          force_tiled=True, tile_bytes_target=4096)

    # Case 4: HW not a multiple of 128 (full-extent lane fallback).
    x4 = jax.random.normal(k2, (2, 8, 10, 10), dtype=jnp.float32)
    check(x4, jnp.ones((8,), jnp.float32), jnp.zeros((8,), jnp.float32),
          force_tiled=True)

    # TODO(synk): switchable/transitional modes only select among identically
    # shaped BatchNorm2d instances (pure Python dispatch) and running-stat
    # buffer updates are host-side state; only the BN forward math is a kernel.
    print("KERNEL_OK")
</pallas_src>

<mosaic_0001>
module attributes {stable_mosaic.version = 11 : i64} {
  func.func @kernel(%arg0: i32, %arg1: memref<2x4x256xf32, #tpu.memory_space<vmem>>, %arg2: memref<4x1xf32, #tpu.memory_space<vmem>>, %arg3: memref<4x1xf32, #tpu.memory_space<vmem>>, %arg4: memref<2x4x256xf32, #tpu.memory_space<vmem>>) attributes {dimension_semantics = [#tpu.dimension_semantics<arbitrary>], iteration_bounds = array<i64: 1>, scalar_prefetch = 0 : i64, scratch_operands = 0 : i64, tpu.core_type = #tpu.core_type<tc>, window_params = [{pipeline_mode = #tpu.pipeline_mode<synchronous>, transform_indices = @transform_0, window_bounds = array<i64: 2, 4, 256>}, {pipeline_mode = #tpu.pipeline_mode<synchronous>, transform_indices = @transform_1, window_bounds = array<i64: 4, 1>}, {pipeline_mode = #tpu.pipeline_mode<synchronous>, transform_indices = @transform_2, window_bounds = array<i64: 4, 1>}, {pipeline_mode = #tpu.pipeline_mode<synchronous>, transform_indices = @transform_3, window_bounds = array<i64: 2, 4, 256>}]} {
    %c0 = arith.constant 0 : index
    %c0_0 = arith.constant 0 : index
    %c0_1 = arith.constant 0 : index
    %0 = vector.load %arg1[%c0, %c0_0, %c0_1] : memref<2x4x256xf32, #tpu.memory_space<vmem>>, vector<2x4x256xf32>
    %cst = arith.constant dense<0.000000e+00> : vector<2x4xf32>
    %1 = vector.multi_reduction <add>, %0, %cst [2] : vector<2x4x256xf32> to vector<2x4xf32>
    %2 = vector.shape_cast %1 : vector<2x4xf32> to vector<2x4x1xf32>
    %cst_2 = arith.constant dense<0.000000e+00> : vector<4x1xf32>
    %3 = vector.multi_reduction <add>, %2, %cst_2 [0] : vector<2x4x1xf32> to vector<4x1xf32>
    %4 = vector.shape_cast %3 : vector<4x1xf32> to vector<1x4x1xf32>
    %cst_3 = arith.constant 0.001953125 : f32
    %5 = vector.broadcast %cst_3 : f32 to vector<1x4x1xf32>
    %6 = arith.mulf %4, %5 : vector<1x4x1xf32>
    %7 = vector.broadcast %6 : vector<1x4x1xf32> to vector<2x4x256xf32>
    %8 = arith.subf %0, %7 : vector<2x4x256xf32>
    %9 = arith.mulf %8, %8 : vector<2x4x256xf32>
    %cst_4 = arith.constant dense<0.000000e+00> : vector<2x4xf32>
    %10 = vector.multi_reduction <add>, %9, %cst_4 [2] : vector<2x4x256xf32> to vector<2x4xf32>
    %11 = vector.shape_cast %10 : vector<2x4xf32> to vector<2x4x1xf32>
    %cst_5 = arith.constant dense<0.000000e+00> : vector<4x1xf32>
    %12 = vector.multi_reduction <add>, %11, %cst_5 [0] : vector<2x4x1xf32> to vector<4x1xf32>
    %13 = vector.shape_cast %12 : vector<4x1xf32> to vector<1x4x1xf32>
    %cst_6 = arith.constant 0.001953125 : f32
    %14 = vector.broadcast %cst_6 : f32 to vector<1x4x1xf32>
    %15 = arith.mulf %13, %14 : vector<1x4x1xf32>
    %cst_7 = arith.constant 9.99999974E-6 : f32
    %16 = vector.broadcast %cst_7 : f32 to vector<1x4x1xf32>
    %17 = arith.addf %15, %16 : vector<1x4x1xf32>
    %18 = math.rsqrt %17 : vector<1x4x1xf32>
    %c0_8 = arith.constant 0 : index
    %c0_9 = arith.constant 0 : index
    %19 = vector.load %arg2[%c0_8, %c0_9] : memref<4x1xf32, #tpu.memory_space<vmem>>, vector<4x1xf32>
    %20 = vector.shape_cast %19 : vector<4x1xf32> to vector<1x4x1xf32>
    %21 = arith.mulf %20, %18 : vector<1x4x1xf32>
    %c0_10 = arith.constant 0 : index
    %c0_11 = arith.constant 0 : index
    %22 = vector.load %arg3[%c0_10, %c0_11] : memref<4x1xf32, #tpu.memory_space<vmem>>, vector<4x1xf32>
    %23 = vector.shape_cast %22 : vector<4x1xf32> to vector<1x4x1xf32>
    %24 = vector.broadcast %21 : vector<1x4x1xf32> to vector<2x4x256xf32>
    %25 = arith.mulf %8, %24 : vector<2x4x256xf32>
    %26 = vector.broadcast %23 : vector<1x4x1xf32> to vector<2x4x256xf32>
    %27 = arith.addf %25, %26 : vector<2x4x256xf32>
    %c0_12 = arith.constant 0 : index
    %c0_13 = arith.constant 0 : index
    %c0_14 = arith.constant 0 : index
    %28 = vector.load %arg4[%c0_12, %c0_13, %c0_14] : memref<2x4x256xf32, #tpu.memory_space<vmem>>, vector<2x4x256xf32>
    tpu.vector_store %arg4[%c0_12, %c0_13, %c0_14], %27 {strides = array<i32>} : memref<2x4x256xf32, #tpu.memory_space<vmem>>, vector<2x4x256xf32>,
    return
  }
  func.func @transform_0(%arg0: i32) -> (i32, i32, i32) {
    %c0_i32 = arith.constant 0 : i32
    %c0_i32_0 = arith.constant 0 : i32
    %c0_i32_1 = arith.constant 0 : i32
    %c0_i32_2 = arith.constant 0 : i32
    return %c0_i32, %c0_i32_0, %c0_i32_1 : i32, i32, i32
  }
  func.func @transform_1(%arg0: i32) -> (i32, i32) {
    %c0_i32 = arith.constant 0 : i32
    %c0_i32_0 = arith.constant 0 : i32
    %c0_i32_1 = arith.constant 0 : i32
    return %c0_i32, %c0_i32_0 : i32, i32
  }
  func.func @transform_2(%arg0: i32) -> (i32, i32) {
    %c0_i32 = arith.constant 0 : i32
    %c0_i32_0 = arith.constant 0 : i32
    %c0_i32_1 = arith.constant 0 : i32
    return %c0_i32, %c0_i32_0 : i32, i32
  }
  func.func @transform_3(%arg0: i32) -> (i32, i32, i32) {
    %c0_i32 = arith.constant 0 : i32
    %c0_i32_0 = arith.constant 0 : i32
    %c0_i32_1 = arith.constant 0 : i32
    %c0_i32_2 = arith.constant 0 : i32
    return %c0_i32, %c0_i32_0, %c0_i32_1 : i32, i32, i32
  }
}

</mosaic_0001>

<bundles_post_ra>
// kernel: tpu_custom_call.1
= control target key start
LH: loop header
LB: loop body
LE: loop exit
PB: predicated region body
PF: predicated region fallthrough
CT: control target
= control target key end

     0   :  { %8 = vsyncpa [#allocation3], 0  ;;  %s271_s0 = inlined_call_operand.hbm [shape: f32[2,4,256], index: 0, kind: input, shape index: {}]   ;;  %s272_s1 = inlined_call_operand.vmem [shape: f32[4,1], index: 1, kind: input, shape index: {}]   ;;  %s273_s2 = inlined_call_operand.vmem [shape: f32[4,1], index: 2, kind: input, shape index: {}]   ;;  %s274_s3 = inlined_call_operand.hbm [shape: f32[2,4,256], index: 3, kind: output, shape index: {}]  }
   0x1   :  { %9 = vsyncpa [#allocation4], 0  ;;  %s197_s12 = smov [#allocation2]   ;;  %s149_s16 = scalar_lea.hbm %s271_s0, 256 }
   0x2   :  { %s15_s13 = sshll.u32 %s197_s12, 4  ;;  %p150_p0 = scmp.ne.s32.totalorder %s271_s0, %s149_s16  ;;  %s16_s13 = int_to_ptr.vmem [resolvable:$true] %s15_s13 }
   0x3   :  { %p153_p1 = scmp.lt.u32.totalorder %s149_s16, %s271_s0 }
   0x5   :  { %p155_p2 = pnand %p153_p1, %p150_p0 }
   0x7   :  { %158 = shalt.err (!%p155_p2)
}
   0x8   :  { %s159_s21 = scalar_lea.vmem %s16_s13, 256  ;;  %p164_p4 = scmp.lt.s32.totalorder %s16_s13, %s16_s13 }
   0x9   :  { %p160_p3 = scmp.ne.s32.totalorder %s16_s13, %s159_s21  ;;  %p165_p5 = scmp.lt.s32.totalorder %s159_s21, %s159_s21 }
   0xb   :  { %p166_p6 = por %p165_p5, %p164_p4 }
   0xd   :  { %p167_p7 = pnand %p166_p6, %p160_p3 }
   0xf   :  { %170 = shalt.err (!%p167_p7)
}
  0x10   :  { %s198_s22 = smov 128   ;;  %s199_s23 = smov 8  }
  0x11   :  { %21 = dma.hbm_to_vmem [thread:$0]  %s271_s0, 256, %s16_s13, [#allocation3], %s198_s22, %s198_s22, %s199_s23  }
  0x12   :  { %193 = dma.done.wait [#allocation3], 256  }
  0x13   :  { %194 = vsyncadd [#allocation3], 4294967040  ;;  %vm37_vm0 = vcmask 1043456   ;;  %v29_v0 = vld [vmem:[#allocation2] sm:$0xff]  ;;  %v30_v1 = vld [vmem:[#allocation2 + $0x8] sm:$0xff]  ;;  %v56_v12 = vlaneseq  ;;  %v201_v35 = vmov 0  }
  0x14   :  { %v33_v2 = vcombine.high %v29_v0, %v29_v0  ;;  %v38_v3 = vsel %vm37_vm0, %v29_v0, 0.0  ;;  %v34_v4 = vcombine.high %v30_v1, %v30_v1  ;;  %v43_v6 = vsel %vm37_vm0, %v30_v1, 0.0  ;;  %143 = vset.pattern.permute.xlu0 %v201_v35  ;;  %144 = vset.pattern.permute.xlu1 %v201_v35  ;;  %v89_v36 = vld [vmem:[%s273_s2] sm:$0xf]  ;;  %s202_s2 = smov [#allocation5]  }
  0x15   :  { %v200_v10 = vmov 839922192   ;;  %v57_v15 = vshrl.u32 %v56_v12, 7  ;;  %v87_v44 = vld [vmem:[%s272_s1] sm:$0xf]  ;;  %s125_s29 = sshll.u32 %s202_s2, 4  ;;  %s126_s29 = int_to_ptr.vmem [resolvable:$true] %s125_s29 }
  0x16   :  { %v39_v5 = vsel %vm37_vm0, %v33_v2, 0.0  ;;  %v44_v7 = vsel %vm37_vm0, %v34_v4, 0.0  ;;  %v54_v11 = vunpack.c.l.s4 %v200_v10  ;;  %s171_s30 = scalar_lea.vmem %s126_s29, 256  ;;  %p176_p9 = scmp.lt.s32.totalorder %s126_s29, %s126_s29 }
  0x17   :  { %v40_v8 = vadd.f32 %v39_v5, %v38_v3  ;;  %v45_v9 = vadd.f32 %v44_v7, %v43_v6  ;;  %p172_p8 = scmp.ne.s32.totalorder %s126_s29, %s171_s30  ;;  %p177_p10 = scmp.lt.s32.totalorder %s171_s30, %s171_s30 }
  0x18   :  { %v55_v14 = vunpack.c.0.s8 %v54_v11 }
  0x19   :  { %41 = vadd.xlane.f32.xlu0 %v40_v8  ;;  %p178_p11 = por %p177_p10, %p176_p9 }
  0x1a   :  { %v58_v19 = vsub.s32 %v55_v14, %v57_v15 }
  0x1b   :  { %p179_p12 = pnand %p178_p11, %p172_p8 }
  0x1d   :  { %46 = vadd.xlane.f32.xlu0 %v45_v9 }
  0xa6   :  { %v42_v13 = vpop.xlane.xlu0 %41 }
  0xa7   :  { %v48_v17 = vsel %vm37_vm0, %v42_v13, 0.0 }
  0xaa   :  { %v47_v16 = vpop.xlane.xlu0 %46 }
  0xab   :  { %v49_v18 = vsel %vm37_vm0, %v47_v16, 0.0 }
  0xac   :  { %v50_v20 = vadd.f32 %v49_v18, %v48_v17 }
  0xae   :  { %v51_v21 = vmul.f32 0.001953125, %v50_v20 }
  0xb0   :  { %v59_v22 = vrot.slane %v51_v21, %v58_v19 }
  0xb2   :  { %v62_v23 = vsub.f32 %v30_v1, %v59_v22  ;;  %v61_v24 = vsub.f32 %v29_v0, %v59_v22 }
  0xb4   :  { %v63_v25 = vmul.f32 %v61_v24, %v61_v24  ;;  %v64_v26 = vmul.f32 %v62_v23, %v62_v23 }
  0xb6   :  { %v67_v27 = vcombine.high %v63_v25, %v63_v25  ;;  %v68_v28 = vcombine.high %v64_v26, %v64_v26  ;;  %v71_v29 = vsel %vm37_vm0, %v63_v25, 0.0  ;;  %v76_v33 = vsel %vm37_vm0, %v64_v26, 0.0 }
  0xb8   :  { %v72_v30 = vsel %vm37_vm0, %v67_v27, 0.0  ;;  %v77_v32 = vsel %vm37_vm0, %v68_v28, 0.0 }
  0xb9   :  { %v73_v31 = vadd.f32 %v72_v30, %v71_v29  ;;  %v78_v34 = vadd.f32 %v77_v32, %v76_v33 }
  0xbb   :  { %74 = vadd.xlane.f32.xlu1 %v73_v31 }
  0xbf   :  { %79 = vadd.xlane.f32.xlu1 %v78_v34 }
  0xd0   :  { %106 = vperm.xlu1 %144, %v89_v36  }
 0x148   :  { %v75_v37 = vpop.xlane.xlu1 %74 }
 0x149   :  { %v81_v39 = vsel %vm37_vm0, %v75_v37, 0.0 }
 0x14c   :  { %v80_v38 = vpop.xlane.xlu1 %79 }
 0x14d   :  { %v82_v40 = vsel %vm37_vm0, %v80_v38, 0.0 }
 0x14e   :  { %v83_v41 = vadd.f32 %v82_v40, %v81_v39 }
 0x150   :  { %v84_v42 = vmul.f32 0.001953125, %v83_v41  ;;  %v107_v47 = vpop.permute.xlu1 %106 }
 0x151   :  { %v114_v50 = vrot.slane %v107_v47, %v58_v19 }
 0x152   :  { %v85_v43 = vadd.f32 1e-05, %v84_v42 }
 0x154   :  { %147 = vrsqrt.f32 %v85_v43 }
 0x15e   :  { %v148_v45 = vpop.eup %147 }
 0x15f   :  { %v88_v46 = vmul.f32 %v148_v45, %v87_v44 }
 0x161   :  { %92 = vperm.xlu0 %143, %v88_v46  }
 0x1e0   :  { %v93_v48 = vpop.permute.xlu0 %92 }
 0x1e1   :  { %v100_v49 = vrot.slane %v93_v48, %v58_v19 }
 0x1e3   :  { %v102_v51 = vmul.f32 %v100_v49, %v61_v24  ;;  %v103_v52 = vmul.f32 %v100_v49, %v62_v23 }
 0x1e5   :  { %v116_v53 = vadd.f32 %v114_v50, %v102_v51  ;;  %v117_v54 = vadd.f32 %v114_v50, %v103_v52 }
 0x1e7   :  { %118 = vst [vmem:[#allocation5] sm:$0xff] %v116_v53  ;;  %119 = vst [vmem:[#allocation5 + $0x8] sm:$0xff] %v117_v54 }
 0x1e8   :  { %182 = shalt.err (!%p179_p12)
}
 0x1e9   :  { %s183_s5 = scalar_lea.hbm %s274_s3, 256 }
 0x1ea   :  { %p184_p13 = scmp.ne.s32.totalorder %s274_s3, %s183_s5  ;;  %p187_p0 = scmp.lt.u32.totalorder %s183_s5, %s274_s3 }
 0x1ec   :  { %p189_p1 = pnand %p187_p0, %p184_p13 }
 0x1ee   :  { %192 = shalt.err (!%p189_p1)
}
 0x1ef   :  { %131 = dma.vmem_to_hbm [thread:$0]  %s126_s29, 256, %s274_s3, [#allocation4], %s198_s22, %s198_s22, %s199_s23  }
 0x1f0   :  { %195 = dma.done.wait [#allocation4], 256  }
 0x1f1   :  { %196 = vsyncadd [#allocation4], 4294967040 }
 0x1f2   :  { %135 = vsyncpa [#allocation3], 1 }
 0x1f3   :  { %136 = vsyncpa [#allocation4], 1 }

</bundles_post_ra>
